<compile_context>
chip_gen: v7x
topology: tpu7x:2x2x1
jax: 0.10.0
libtpu: 0.0.40
codegen_flags: <defaults>
</compile_context>

<pallas_src>
import math

import jax
import jax.numpy as jnp
from jax.experimental import pallas as pl
from jax.experimental.pallas import tpu as pltpu

EMBED_DIM = 32
NUM_HEADS = 4
HEAD_DIM = EMBED_DIM // NUM_HEADS
SEQ_LEN = 8
BATCH = 2


def mha_kernel(q_ref, qpos_ref, wqk_ref, wv_ref, wo_ref, bqk_ref, bo_ref,
               out_ref):
    # Per grid step (one batch element):
    #   q_ref / qpos_ref / out_ref : (1, L, E)
    #   wqk_ref : (E, 2E)  (scale folded into the Q half, x @ W layout)
    #   wv_ref  : (E, E)   (value bias folded into bo)
    #   wo_ref  : (E, E)
    #   bqk_ref : (1, 2E)
    #   bo_ref  : (1, E)   (= b_v @ Wo + b_o)
    E, H, Dh = EMBED_DIM, NUM_HEADS, HEAD_DIM

    identity = q_ref[0]                     # (L, E) original query (= value)
    q_eff = identity + qpos_ref[0]          # query + query_pos (= key + key_pos)

    # Fused Q/K projection: one MXU push instead of two.
    qkp = jnp.dot(q_eff, wqk_ref[...],
                  preferred_element_type=jnp.float32) + bqk_ref[...]  # (L, 2E)
    # V projection (bias folded into bo on the host side).
    vp = jnp.dot(identity, wv_ref[...],
                 preferred_element_type=jnp.float32)                  # (L, E)

    qp = qkp[:, :E]                         # (L, E), already scaled by 1/sqrt(Dh)
    kpT = qkp[:, E:].T                      # (E, L): one transpose for all heads

    heads = []
    for h in range(H):                      # static unroll over heads
        sl = slice(h * Dh, (h + 1) * Dh)
        qh = qp[:, sl]                      # (L, Dh)   lane slice
        kTh = kpT[sl, :]                    # (Dh, L)   tile-aligned sublane slice
        vh = vp[:, sl]                      # (L, Dh)

        s = jnp.dot(qh, kTh, preferred_element_type=jnp.float32)      # (L, L)
        s = s - jnp.max(s, axis=-1, keepdims=True)
        e = jnp.exp(s)
        inv = pl.reciprocal(jnp.sum(e, axis=-1, keepdims=True), approx=True)
        p = e * inv
        heads.append(jnp.dot(p, vh, preferred_element_type=jnp.float32))
    attn = jnp.concatenate(heads, axis=-1)                             # (L, E)

    proj = jnp.dot(attn, wo_ref[...],
                   preferred_element_type=jnp.float32) + bo_ref[...]
    # proj_drop has p=0.0 -> identity
    out_ref[0] = identity + proj


def multihead_attention(query, query_pos, in_proj_weight, in_proj_bias,
                        out_proj_weight, out_proj_bias):
    """query/query_pos: (B, L, E). Parameters in PyTorch nn.MultiheadAttention
    layout. All weight folding/fusion happens here, once, outside the kernel."""
    B, L, E = query.shape
    scale = 1.0 / math.sqrt(HEAD_DIM)

    wq_t = in_proj_weight[:E].T * scale              # scale folded into Wq
    wk_t = in_proj_weight[E:2 * E].T
    wv_t = in_proj_weight[2 * E:].T
    wo_t = out_proj_weight.T

    w_qk = jnp.concatenate([wq_t, wk_t], axis=1)                     # (E, 2E)
    b_qk = jnp.concatenate([in_proj_bias[:E] * scale,
                            in_proj_bias[E:2 * E]]).reshape(1, 2 * E)
    b_v = in_proj_bias[2 * E:]
    # softmax rows sum to 1  =>  value bias passes straight through attention
    # and can be folded into the output bias.
    b_o = (b_v @ wo_t + out_proj_bias).reshape(1, E)

    qspec = pl.BlockSpec((1, L, E), lambda b: (b, 0, 0))
    wqk_spec = pl.BlockSpec((E, 2 * E), lambda b: (0, 0))
    wee_spec = pl.BlockSpec((E, E), lambda b: (0, 0))
    bqk_spec = pl.BlockSpec((1, 2 * E), lambda b: (0, 0))
    bo_spec = pl.BlockSpec((1, E), lambda b: (0, 0))

    return pl.pallas_call(
        mha_kernel,
        out_shape=jax.ShapeDtypeStruct((B, L, E), jnp.float32),
        grid_spec=pltpu.PrefetchScalarGridSpec(
            num_scalar_prefetch=0,
            grid=(B,),
            in_specs=[qspec, qspec, wqk_spec, wee_spec, wee_spec,
                      bqk_spec, bo_spec],
            out_specs=qspec,
        ),
        # "parallel" lets the B=2 axis be sharded across the two v7x
        # TensorCores; on single-TC chips it is just a short sequential loop.
        compiler_params=pltpu.CompilerParams(dimension_semantics=("parallel",)),
    )(query, query_pos, w_qk, wv_t, wo_t, b_qk, b_o)


def reference_forward(query, query_pos, in_w, in_b, out_w, out_b):
    """Pure-JAX reference mirroring torch.nn.MultiheadAttention + wrapper."""
    E, H, Dh = EMBED_DIM, NUM_HEADS, HEAD_DIM
    identity = query
    q = query + query_pos
    k = query + query_pos
    v = query
    wq, wk, wv = in_w[:E], in_w[E:2 * E], in_w[2 * E:]
    bq, bk, bv = in_b[:E], in_b[E:2 * E], in_b[2 * E:]
    qp = q @ wq.T + bq
    kp = k @ wk.T + bk
    vp = v @ wv.T + bv
    B, L, _ = query.shape
    qh = qp.reshape(B, L, H, Dh).transpose(0, 2, 1, 3)
    kh = kp.reshape(B, L, H, Dh).transpose(0, 2, 1, 3)
    vh = vp.reshape(B, L, H, Dh).transpose(0, 2, 1, 3)
    s = jnp.einsum('bhqd,bhkd->bhqk', qh, kh) / math.sqrt(Dh)
    p = jax.nn.softmax(s, axis=-1)
    o = jnp.einsum('bhqk,bhkd->bhqd', p, vh)
    o = o.transpose(0, 2, 1, 3).reshape(B, L, E)
    o = o @ out_w.T + out_b
    return identity + o


if __name__ == "__main__":
    key = jax.random.PRNGKey(0)
    k_q, k_pos, k_inw, k_inb, k_outw, k_outb = jax.random.split(key, 6)

    query = jax.random.normal(k_q, (BATCH, SEQ_LEN, EMBED_DIM), jnp.float32)
    query_pos = jax.random.normal(k_pos, (BATCH, SEQ_LEN, EMBED_DIM), jnp.float32)

    # Deterministic synthetic parameters (shapes match nn.MultiheadAttention).
    in_proj_weight = 0.1 * jax.random.normal(
        k_inw, (3 * EMBED_DIM, EMBED_DIM), jnp.float32)
    in_proj_bias = 0.05 * jax.random.normal(k_inb, (3 * EMBED_DIM,), jnp.float32)
    out_proj_weight = 0.1 * jax.random.normal(
        k_outw, (EMBED_DIM, EMBED_DIM), jnp.float32)
    out_proj_bias = 0.05 * jax.random.normal(k_outb, (EMBED_DIM,), jnp.float32)

    out = multihead_attention(query, query_pos, in_proj_weight, in_proj_bias,
                              out_proj_weight, out_proj_bias)
    out = jax.block_until_ready(out)

    ref = reference_forward(query, query_pos, in_proj_weight, in_proj_bias,
                            out_proj_weight, out_proj_bias)
    # Tolerance mildly relaxed vs. 1e-4 because the softmax denominator uses
    # the EUP approximate reciprocal (per performance review).
    assert jnp.allclose(out, ref, atol=2e-3, rtol=2e-3), "mismatch vs reference"

    print("KERNEL_OK")
</pallas_src>

<mosaic_0001>
module attributes {stable_mosaic.version = 11 : i64} {
  func.func @mha_kernel(%arg0: i32, %arg1: memref<1x8x32xf32, #tpu.memory_space<vmem>>, %arg2: memref<1x8x32xf32, #tpu.memory_space<vmem>>, %arg3: memref<32x64xf32, #tpu.memory_space<vmem>>, %arg4: memref<32x32xf32, #tpu.memory_space<vmem>>, %arg5: memref<32x32xf32, #tpu.memory_space<vmem>>, %arg6: memref<1x64xf32, #tpu.memory_space<vmem>>, %arg7: memref<1x32xf32, #tpu.memory_space<vmem>>, %arg8: memref<1x8x32xf32, #tpu.memory_space<vmem>>) attributes {dimension_semantics = [#tpu.dimension_semantics<parallel>], iteration_bounds = array<i64: 2>, scalar_prefetch = 0 : i64, scratch_operands = 0 : i64, tpu.core_type = #tpu.core_type<tc>, window_params = [{transform_indices = @transform_0, window_bounds = array<i64: 1, 8, 32>}, {transform_indices = @transform_1, window_bounds = array<i64: 1, 8, 32>}, {pipeline_mode = #tpu.pipeline_mode<synchronous>, transform_indices = @transform_2, window_bounds = array<i64: 32, 64>}, {pipeline_mode = #tpu.pipeline_mode<synchronous>, transform_indices = @transform_3, window_bounds = array<i64: 32, 32>}, {pipeline_mode = #tpu.pipeline_mode<synchronous>, transform_indices = @transform_4, window_bounds = array<i64: 32, 32>}, {pipeline_mode = #tpu.pipeline_mode<synchronous>, transform_indices = @transform_5, window_bounds = array<i64: 1, 64>}, {pipeline_mode = #tpu.pipeline_mode<synchronous>, transform_indices = @transform_6, window_bounds = array<i64: 1, 32>}, {transform_indices = @transform_7, window_bounds = array<i64: 1, 8, 32>}]} {
    %c0 = arith.constant 0 : index
    %c0_0 = arith.constant 0 : index
    %c0_1 = arith.constant 0 : index
    %0 = vector.load %arg1[%c0, %c0_0, %c0_1] : memref<1x8x32xf32, #tpu.memory_space<vmem>>, vector<1x8x32xf32>
    %1 = vector.shape_cast %0 : vector<1x8x32xf32> to vector<8x32xf32>
    %c0_2 = arith.constant 0 : index
    %c0_3 = arith.constant 0 : index
    %c0_4 = arith.constant 0 : index
    %2 = vector.load %arg2[%c0_2, %c0_3, %c0_4] : memref<1x8x32xf32, #tpu.memory_space<vmem>>, vector<1x8x32xf32>
    %3 = vector.shape_cast %2 : vector<1x8x32xf32> to vector<8x32xf32>
    %4 = arith.addf %1, %3 : vector<8x32xf32>
    %c0_5 = arith.constant 0 : index
    %c0_6 = arith.constant 0 : index
    %5 = vector.load %arg3[%c0_5, %c0_6] : memref<32x64xf32, #tpu.memory_space<vmem>>, vector<32x64xf32>
    %cst = arith.constant dense<0.000000e+00> : vector<8x64xf32>
    %6 = tpu.matmul %4, %5, %cst {dimension_numbers = #tpu.dot_dimension_numbers<[1], [0], [0], [1], [0, 0, 1, 1], [], []>} : vector<8x32xf32>, vector<32x64xf32>, vector<8x64xf32> -> vector<8x64xf32>
    %c0_7 = arith.constant 0 : index
    %c0_8 = arith.constant 0 : index
    %7 = vector.load %arg6[%c0_7, %c0_8] : memref<1x64xf32, #tpu.memory_space<vmem>>, vector<1x64xf32>
    %8 = vector.broadcast %7 : vector<1x64xf32> to vector<8x64xf32>
    %9 = arith.addf %6, %8 : vector<8x64xf32>
    %c0_9 = arith.constant 0 : index
    %c0_10 = arith.constant 0 : index
    %10 = vector.load %arg4[%c0_9, %c0_10] : memref<32x32xf32, #tpu.memory_space<vmem>>, vector<32x32xf32>
    %cst_11 = arith.constant dense<0.000000e+00> : vector<8x32xf32>
    %11 = tpu.matmul %1, %10, %cst_11 {dimension_numbers = #tpu.dot_dimension_numbers<[1], [0], [0], [1], [0, 0, 1, 1], [], []>} : vector<8x32xf32>, vector<32x32xf32>, vector<8x32xf32> -> vector<8x32xf32>
    %12 = vector.extract_strided_slice %9 {offsets = [0, 0], sizes = [8, 32], strides = [1, 1]} : vector<8x64xf32> to vector<8x32xf32>
    %13 = vector.extract_strided_slice %9 {offsets = [0, 32], sizes = [8, 32], strides = [1, 1]} : vector<8x64xf32> to vector<8x32xf32>
    %14 = tpu.transpose %13, [1, 0] : vector<8x32xf32> -> vector<32x8xf32>
    %15 = vector.extract_strided_slice %12 {offsets = [0, 0], sizes = [8, 8], strides = [1, 1]} : vector<8x32xf32> to vector<8x8xf32>
    %16 = vector.extract_strided_slice %14 {offsets = [0, 0], sizes = [8, 8], strides = [1, 1]} : vector<32x8xf32> to vector<8x8xf32>
    %17 = vector.extract_strided_slice %11 {offsets = [0, 0], sizes = [8, 8], strides = [1, 1]} : vector<8x32xf32> to vector<8x8xf32>
    %cst_12 = arith.constant dense<0.000000e+00> : vector<8x8xf32>
    %18 = tpu.matmul %15, %16, %cst_12 {dimension_numbers = #tpu.dot_dimension_numbers<[1], [0], [0], [1], [0, 0, 1, 1], [], []>} : vector<8x8xf32>, vector<8x8xf32>, vector<8x8xf32> -> vector<8x8xf32>
    %cst_13 = arith.constant dense<0xFF800000> : vector<8xf32>
    %19 = vector.multi_reduction <maximumf>, %18, %cst_13 [1] : vector<8x8xf32> to vector<8xf32>
    %20 = vector.shape_cast %19 : vector<8xf32> to vector<8x1xf32>
    %21 = vector.broadcast %20 : vector<8x1xf32> to vector<8x8xf32>
    %22 = arith.subf %18, %21 : vector<8x8xf32>
    %23 = math.exp %22 : vector<8x8xf32>
    %cst_14 = arith.constant dense<0.000000e+00> : vector<8xf32>
    %24 = vector.multi_reduction <add>, %23, %cst_14 [1] : vector<8x8xf32> to vector<8xf32>
    %25 = vector.shape_cast %24 : vector<8xf32> to vector<8x1xf32>
    %26 = tpu.reciprocal %25 {approx = true} : vector<8x1xf32> -> vector<8x1xf32>
    %27 = vector.broadcast %26 : vector<8x1xf32> to vector<8x8xf32>
    %28 = arith.mulf %23, %27 : vector<8x8xf32>
    %cst_15 = arith.constant dense<0.000000e+00> : vector<8x8xf32>
    %29 = tpu.matmul %28, %17, %cst_15 {dimension_numbers = #tpu.dot_dimension_numbers<[1], [0], [0], [1], [0, 0, 1, 1], [], []>} : vector<8x8xf32>, vector<8x8xf32>, vector<8x8xf32> -> vector<8x8xf32>
    %30 = vector.extract_strided_slice %12 {offsets = [0, 8], sizes = [8, 8], strides = [1, 1]} : vector<8x32xf32> to vector<8x8xf32>
    %31 = vector.extract_strided_slice %14 {offsets = [8, 0], sizes = [8, 8], strides = [1, 1]} : vector<32x8xf32> to vector<8x8xf32>
    %32 = vector.extract_strided_slice %11 {offsets = [0, 8], sizes = [8, 8], strides = [1, 1]} : vector<8x32xf32> to vector<8x8xf32>
    %cst_16 = arith.constant dense<0.000000e+00> : vector<8x8xf32>
    %33 = tpu.matmul %30, %31, %cst_16 {dimension_numbers = #tpu.dot_dimension_numbers<[1], [0], [0], [1], [0, 0, 1, 1], [], []>} : vector<8x8xf32>, vector<8x8xf32>, vector<8x8xf32> -> vector<8x8xf32>
    %cst_17 = arith.constant dense<0xFF800000> : vector<8xf32>
    %34 = vector.multi_reduction <maximumf>, %33, %cst_17 [1] : vector<8x8xf32> to vector<8xf32>
    %35 = vector.shape_cast %34 : vector<8xf32> to vector<8x1xf32>
    %36 = vector.broadcast %35 : vector<8x1xf32> to vector<8x8xf32>
    %37 = arith.subf %33, %36 : vector<8x8xf32>
    %38 = math.exp %37 : vector<8x8xf32>
    %cst_18 = arith.constant dense<0.000000e+00> : vector<8xf32>
    %39 = vector.multi_reduction <add>, %38, %cst_18 [1] : vector<8x8xf32> to vector<8xf32>
    %40 = vector.shape_cast %39 : vector<8xf32> to vector<8x1xf32>
    %41 = tpu.reciprocal %40 {approx = true} : vector<8x1xf32> -> vector<8x1xf32>
    %42 = vector.broadcast %41 : vector<8x1xf32> to vector<8x8xf32>
    %43 = arith.mulf %38, %42 : vector<8x8xf32>
    %cst_19 = arith.constant dense<0.000000e+00> : vector<8x8xf32>
    %44 = tpu.matmul %43, %32, %cst_19 {dimension_numbers = #tpu.dot_dimension_numbers<[1], [0], [0], [1], [0, 0, 1, 1], [], []>} : vector<8x8xf32>, vector<8x8xf32>, vector<8x8xf32> -> vector<8x8xf32>
    %45 = vector.extract_strided_slice %12 {offsets = [0, 16], sizes = [8, 8], strides = [1, 1]} : vector<8x32xf32> to vector<8x8xf32>
    %46 = vector.extract_strided_slice %14 {offsets = [16, 0], sizes = [8, 8], strides = [1, 1]} : vector<32x8xf32> to vector<8x8xf32>
    %47 = vector.extract_strided_slice %11 {offsets = [0, 16], sizes = [8, 8], strides = [1, 1]} : vector<8x32xf32> to vector<8x8xf32>
    %cst_20 = arith.constant dense<0.000000e+00> : vector<8x8xf32>
    %48 = tpu.matmul %45, %46, %cst_20 {dimension_numbers = #tpu.dot_dimension_numbers<[1], [0], [0], [1], [0, 0, 1, 1], [], []>} : vector<8x8xf32>, vector<8x8xf32>, vector<8x8xf32> -> vector<8x8xf32>
    %cst_21 = arith.constant dense<0xFF800000> : vector<8xf32>
    %49 = vector.multi_reduction <maximumf>, %48, %cst_21 [1] : vector<8x8xf32> to vector<8xf32>
    %50 = vector.shape_cast %49 : vector<8xf32> to vector<8x1xf32>
    %51 = vector.broadcast %50 : vector<8x1xf32> to vector<8x8xf32>
    %52 = arith.subf %48, %51 : vector<8x8xf32>
    %53 = math.exp %52 : vector<8x8xf32>
    %cst_22 = arith.constant dense<0.000000e+00> : vector<8xf32>
    %54 = vector.multi_reduction <add>, %53, %cst_22 [1] : vector<8x8xf32> to vector<8xf32>
    %55 = vector.shape_cast %54 : vector<8xf32> to vector<8x1xf32>
    %56 = tpu.reciprocal %55 {approx = true} : vector<8x1xf32> -> vector<8x1xf32>
    %57 = vector.broadcast %56 : vector<8x1xf32> to vector<8x8xf32>
    %58 = arith.mulf %53, %57 : vector<8x8xf32>
    %cst_23 = arith.constant dense<0.000000e+00> : vector<8x8xf32>
    %59 = tpu.matmul %58, %47, %cst_23 {dimension_numbers = #tpu.dot_dimension_numbers<[1], [0], [0], [1], [0, 0, 1, 1], [], []>} : vector<8x8xf32>, vector<8x8xf32>, vector<8x8xf32> -> vector<8x8xf32>
    %60 = vector.extract_strided_slice %12 {offsets = [0, 24], sizes = [8, 8], strides = [1, 1]} : vector<8x32xf32> to vector<8x8xf32>
    %61 = vector.extract_strided_slice %14 {offsets = [24, 0], sizes = [8, 8], strides = [1, 1]} : vector<32x8xf32> to vector<8x8xf32>
    %62 = vector.extract_strided_slice %11 {offsets = [0, 24], sizes = [8, 8], strides = [1, 1]} : vector<8x32xf32> to vector<8x8xf32>
    %cst_24 = arith.constant dense<0.000000e+00> : vector<8x8xf32>
    %63 = tpu.matmul %60, %61, %cst_24 {dimension_numbers = #tpu.dot_dimension_numbers<[1], [0], [0], [1], [0, 0, 1, 1], [], []>} : vector<8x8xf32>, vector<8x8xf32>, vector<8x8xf32> -> vector<8x8xf32>
    %cst_25 = arith.constant dense<0xFF800000> : vector<8xf32>
    %64 = vector.multi_reduction <maximumf>, %63, %cst_25 [1] : vector<8x8xf32> to vector<8xf32>
    %65 = vector.shape_cast %64 : vector<8xf32> to vector<8x1xf32>
    %66 = vector.broadcast %65 : vector<8x1xf32> to vector<8x8xf32>
    %67 = arith.subf %63, %66 : vector<8x8xf32>
    %68 = math.exp %67 : vector<8x8xf32>
    %cst_26 = arith.constant dense<0.000000e+00> : vector<8xf32>
    %69 = vector.multi_reduction <add>, %68, %cst_26 [1] : vector<8x8xf32> to vector<8xf32>
    %70 = vector.shape_cast %69 : vector<8xf32> to vector<8x1xf32>
    %71 = tpu.reciprocal %70 {approx = true} : vector<8x1xf32> -> vector<8x1xf32>
    %72 = vector.broadcast %71 : vector<8x1xf32> to vector<8x8xf32>
    %73 = arith.mulf %68, %72 : vector<8x8xf32>
    %cst_27 = arith.constant dense<0.000000e+00> : vector<8x8xf32>
    %74 = tpu.matmul %73, %62, %cst_27 {dimension_numbers = #tpu.dot_dimension_numbers<[1], [0], [0], [1], [0, 0, 1, 1], [], []>} : vector<8x8xf32>, vector<8x8xf32>, vector<8x8xf32> -> vector<8x8xf32>
    %75 = tpu.concatenate %29, %44, %59, %74 in 1 : vector<8x8xf32>, vector<8x8xf32>, vector<8x8xf32>, vector<8x8xf32> -> vector<8x32xf32>
    %c0_28 = arith.constant 0 : index
    %c0_29 = arith.constant 0 : index
    %76 = vector.load %arg5[%c0_28, %c0_29] : memref<32x32xf32, #tpu.memory_space<vmem>>, vector<32x32xf32>
    %cst_30 = arith.constant dense<0.000000e+00> : vector<8x32xf32>
    %77 = tpu.matmul %75, %76, %cst_30 {dimension_numbers = #tpu.dot_dimension_numbers<[1], [0], [0], [1], [0, 0, 1, 1], [], []>} : vector<8x32xf32>, vector<32x32xf32>, vector<8x32xf32> -> vector<8x32xf32>
    %c0_31 = arith.constant 0 : index
    %c0_32 = arith.constant 0 : index
    %78 = vector.load %arg7[%c0_31, %c0_32] : memref<1x32xf32, #tpu.memory_space<vmem>>, vector<1x32xf32>
    %79 = vector.broadcast %78 : vector<1x32xf32> to vector<8x32xf32>
    %80 = arith.addf %77, %79 : vector<8x32xf32>
    %81 = arith.addf %1, %80 : vector<8x32xf32>
    %c0_33 = arith.constant 0 : index
    %c0_34 = arith.constant 0 : index
    %c0_35 = arith.constant 0 : index
    %82 = vector.load %arg8[%c0_33, %c0_34, %c0_35] : memref<1x8x32xf32, #tpu.memory_space<vmem>>, vector<1x8x32xf32>
    %83 = vector.shape_cast %82 : vector<1x8x32xf32> to vector<8x32xf32>
    %84 = vector.shape_cast %81 : vector<8x32xf32> to vector<1x8x32xf32>
    tpu.vector_store %arg8[%c0_33, %c0_34, %c0_35], %84 {strides = array<i32>} : memref<1x8x32xf32, #tpu.memory_space<vmem>>, vector<1x8x32xf32>,
    return
  }
  func.func @transform_0(%arg0: i32) -> (i32, i32, i32) {
    %c0_i32 = arith.constant 0 : i32
    %c0_i32_0 = arith.constant 0 : i32
    %c0_i32_1 = arith.constant 0 : i32
    return %arg0, %c0_i32, %c0_i32_0 : i32, i32, i32
  }
  func.func @transform_1(%arg0: i32) -> (i32, i32, i32) {
    %c0_i32 = arith.constant 0 : i32
    %c0_i32_0 = arith.constant 0 : i32
    %c0_i32_1 = arith.constant 0 : i32
    return %arg0, %c0_i32, %c0_i32_0 : i32, i32, i32
  }
  func.func @transform_2(%arg0: i32) -> (i32, i32) {
    %c0_i32 = arith.constant 0 : i32
    %c0_i32_0 = arith.constant 0 : i32
    %c0_i32_1 = arith.constant 0 : i32
    return %c0_i32, %c0_i32_0 : i32, i32
  }
  func.func @transform_3(%arg0: i32) -> (i32, i32) {
    %c0_i32 = arith.constant 0 : i32
    %c0_i32_0 = arith.constant 0 : i32
    %c0_i32_1 = arith.constant 0 : i32
    return %c0_i32, %c0_i32_0 : i32, i32
  }
  func.func @transform_4(%arg0: i32) -> (i32, i32) {
    %c0_i32 = arith.constant 0 : i32
    %c0_i32_0 = arith.constant 0 : i32
    %c0_i32_1 = arith.constant 0 : i32
    return %c0_i32, %c0_i32_0 : i32, i32
  }
  func.func @transform_5(%arg0: i32) -> (i32, i32) {
    %c0_i32 = arith.constant 0 : i32
    %c0_i32_0 = arith.constant 0 : i32
    %c0_i32_1 = arith.constant 0 : i32
    return %c0_i32, %c0_i32_0 : i32, i32
  }
  func.func @transform_6(%arg0: i32) -> (i32, i32) {
    %c0_i32 = arith.constant 0 : i32
    %c0_i32_0 = arith.constant 0 : i32
    %c0_i32_1 = arith.constant 0 : i32
    return %c0_i32, %c0_i32_0 : i32, i32
  }
  func.func @transform_7(%arg0: i32) -> (i32, i32, i32) {
    %c0_i32 = arith.constant 0 : i32
    %c0_i32_0 = arith.constant 0 : i32
    %c0_i32_1 = arith.constant 0 : i32
    return %arg0, %c0_i32, %c0_i32_0 : i32, i32, i32
  }
}

</mosaic_0001>

<bundles_post_ra>
// kernel: tpu_custom_call.1
= control target key start
LH: loop header
LB: loop body
LE: loop exit
PB: predicated region body
PF: predicated region fallthrough
CT: control target
= control target key end

     0   :  { %s2379_s0 = inlined_call_operand.hbm [shape: f32[2,8,32], index: 0, kind: input, shape index: {}]   ;;  %s2380_s1 = inlined_call_operand.hbm [shape: f32[2,8,32], index: 1, kind: input, shape index: {}]   ;;  %s2381_s2 = inlined_call_operand.hbm [shape: f32[32,64], index: 2, kind: input, shape index: {}]   ;;  %s2382_s3 = inlined_call_operand.hbm [shape: f32[32,32], index: 3, kind: input, shape index: {}]   ;;  %s2383_s4 = inlined_call_operand.hbm [shape: f32[32,32], index: 4, kind: input, shape index: {}]   ;;  %s2384_s5 = inlined_call_operand.vmem [shape: f32[1,64], index: 5, kind: input, shape index: {}]   ;;  %s2385_s6 = inlined_call_operand.vmem [shape: f32[1,32], index: 6, kind: input, shape index: {}]   ;;  %s2386_s7 = inlined_call_operand.hbm [shape: f32[2,8,32], index: 7, kind: output, shape index: {}]  }
   0x1   :  { %2392 = sst [smem:[#allocation18_spill]] %s2381_s2 }
   0x2   :  { %2393 = sst [smem:[#allocation19_spill]] %s2382_s3 }
   0x3   :  { %2394 = sst [smem:[#allocation20_spill]] %s2383_s4 }
   0x4   :  { %12 = vsyncpa [#allocation3], 0 }
   0x5   :  { %14 = vsyncpa [#allocation3 + $0x1], 0 }
   0x6   :  { %15 = vsyncpa [#allocation6], 0 }
   0x7   :  { %17 = vsyncpa [#allocation6 + $0x1], 0 }
   0x8   :  { %18 = vsyncpa [#allocation9], 0 }
   0x9   :  { %19 = vsyncpa [#allocation4], 0 }
   0xa   :  { %21 = vsyncpa [#allocation4 + $0x1], 0  ;;  %s1993_s24 = smov 0   ;;  %s1995_s25 = smov 0  }
   0xb   :  { %s1997_s26 = smov 0   ;;  %s1999_s27 = smov 0  }
   0xc LB: > { %s2014_s28 = sadd.s32 4294967295, %s1930_s27   ;;  %s1435_s29 = sadd.s32 4294967294, %s1930_s27   ;;  %s1930_s27 = sphi %s1999_s27, %s2420_s27   ;;  %s1926_s26 = sphi %s1997_s26, %s2419_s26   ;;  %s1922_s25 = sphi %s1995_s25, %s2418_s25   ;;  %s1918_s24 = sphi %s1993_s24, %s2417_s24  }
   0xd   : > { %p47_p0 = scmp.ne.s32.totalorder %s1922_s25, %s1918_s24  ;;  %p2387_p1 = scmp.eq.s32.totalorder %s2014_s28, 0 }
   0xe   : > { %p208_p3 = scmp.eq.s32.totalorder %s1435_s29, 1  ;;  %p1436_p5 = scmp.ge.s32.totalorder %s1930_s27, 1 }
   0xf   : > { %p2023_p4 = por %p2387_p1, %p47_p0  ;;  %p215_p7 = scmp.lt.s32.totalorder %s1930_s27, 3 }
  0x10   : > { %p2028_p6 = por %p208_p3, %p47_p0  ;;  %s1932_s10 = smov [#allocation7]  }
  0x11   : > { %s2395_s30 = scalar_select %p2023_p4, 1, 0 }
  0x12   : > { %s2396_s8 = scalar_select %p2028_p6, 1, 0 }
  0x13   : > { %p2033_p8 = pnand %p1436_p5, %p215_p7  ;;  %s227_s11 = sshll.u32 %s1932_s10, 4  ;;  %s2037_s11 = int_to_ptr.vmem [resolvable:$true] %s227_s11 }
  0x14   : > { %2397 = sst [smem:[#allocation17_spill]] %s2396_s8  ;;  %s1933_s13 = smov [#allocation8]  }
  0x15   : > { %s2398_s9 = scalar_select %p2033_p8, 1, 0 }
  0x16   : > { %p1613_p9 = pneg %p2033_p8  ;;  %s240_s14 = sshll.u32 %s1933_s13, 4  ;;  %s2048_s14 = int_to_ptr.vmem [resolvable:$true] %s240_s14 }
  0x17   : > { %s1934_s15 = smov [#allocation10]   ;;  %s2400_s2 = sld [smem:[#allocation18_spill]] }
  0x18   : > { %p2044_p11 = pnand %p1613_p9, %p2387_p1  ;;  %s2050_s16 = sshll.u32 %s1934_s15, 4  ;;  %s254_s16 = int_to_ptr.vmem [resolvable:$true] %s2050_s16 }
  0x1a   : > { %p2060_p13 = pneg %p2044_p11 }
  0x1d   : > { %s1708_s19 = scalar_lea.hbm %s2400_s2, 512 }
  0x1e   : > { %p1709_p12 = scmp.ne.s32.totalorder %s2400_s2, %s1708_s19  ;;  %p1715_p5 = scmp.lt.u32.totalorder %s1708_s19, %s2400_s2 }
  0x20   : > { %p1711_p0 = pnand %p2060_p13, %p1709_p12 }
  0x22   : > { %p1712_p3 = pneg %p1711_p0 }
  0x24   : > { %p1717_p7 = pnand %p1715_p5, %p1712_p3 }
  0x26   : > { %1720 = shalt.err (!%p1717_p7)
}
  0x27   : > { %s1721_s10 = scalar_lea.vmem %s2037_s11, 512  ;;  %p1729_p2 = scmp.lt.s32.totalorder %s2037_s11, %s2037_s11 }
  0x28   : > { %p1722_p9 = scmp.ne.s32.totalorder %s2037_s11, %s1721_s10  ;;  %p1730_p6 = scmp.lt.s32.totalorder %s1721_s10, %s1721_s10 }
  0x2a   : > { %p1724_p10 = pnand %p1722_p9, %p2060_p13  ;;  %p1731_p12 = por %p1730_p6, %p1729_p2 }
  0x2c   : > { %p1725_p1 = pneg %p1724_p10 }
  0x2e   : > { %p1732_p0 = pnand %p1731_p12, %p1725_p1 }
  0x30   : > { %1735 = shalt.err (!%p1732_p0)
}
  0x31   : > { %s1935_s13 = smov 128   ;;  %s1936_s15 = smov 8  }
  0x32   : > { %1616 = dma.hbm_to_vmem [thread:$0]  (!%p2044_p11), %s2400_s2, 512, %s2037_s11, [#allocation6], %s1935_s13, %s1935_s13, %s1936_s15  }
  0x33   : > { %s2402_s3 = sld [smem:[#allocation19_spill]] }
  0x39   : > { %s1736_s21 = scalar_lea.hbm %s2402_s3, 512 }
  0x3a   : > { %p1737_p1 = scmp.ne.s32.totalorder %s2402_s3, %s1736_s21  ;;  %p1743_p10 = scmp.lt.u32.totalorder %s1736_s21, %s2402_s3 }
  0x3c   : > { %p1739_p2 = pnand %p1737_p1, %p2060_p13 }
  0x3e   : > { %p1740_p6 = pneg %p1739_p2 }
  0x40   : > { %p1745_p3 = pnand %p1743_p10, %p1740_p6 }
  0x42   : > { %1748 = shalt.err (!%p1745_p3)
}
  0x43   : > { %s1749_s11 = scalar_lea.vmem %s2048_s14, 512  ;;  %p1757_p12 = scmp.lt.s32.totalorder %s2048_s14, %s2048_s14 }
  0x44   : > { %p1750_p5 = scmp.ne.s32.totalorder %s2048_s14, %s1749_s11  ;;  %p1758_p0 = scmp.lt.s32.totalorder %s1749_s11, %s1749_s11 }
  0x46   : > { %p1752_p7 = pnand %p1750_p5, %p2060_p13  ;;  %p1759_p1 = por %p1758_p0, %p1757_p12 }
  0x48   : > { %p1753_p9 = pneg %p1752_p7 }
  0x4a   : > { %p1760_p2 = pnand %p1759_p1, %p1753_p9 }
  0x4c   : > { %1763 = shalt.err (!%p1760_p2)
}
  0x4d   : > { %1619 = dma.hbm_to_vmem [thread:$0]  (!%p2044_p11), %s2402_s3, 512, %s2048_s14, [#allocation9], %s1935_s13, %s1935_s13, %s1936_s15  }
  0x4e   : > { %s2403_s4 = sld [smem:[#allocation20_spill]] }
  0x54   : > { %s1764_s20 = scalar_lea.hbm %s2403_s4, 512 }
  0x55   : > { %p1765_p6 = scmp.ne.s32.totalorder %s2403_s4, %s1764_s20  ;;  %p1771_p5 = scmp.lt.u32.totalorder %s1764_s20, %s2403_s4 }
  0x57   : > { %p1767_p10 = pnand %p1765_p6, %p2060_p13 }
  0x59   : > { %p1768_p3 = pneg %p1767_p10 }
  0x5b   : > { %p1773_p7 = pnand %p1771_p5, %p1768_p3 }
  0x5d   : > { %1776 = shalt.err (!%p1773_p7)
}
  0x5e   : > { %s1777_s11 = scalar_lea.vmem %s254_s16, 512  ;;  %p1785_p1 = scmp.lt.s32.totalorder %s254_s16, %s254_s16 }
  0x5f   : > { %p1778_p9 = scmp.ne.s32.totalorder %s254_s16, %s1777_s11  ;;  %p1786_p2 = scmp.lt.s32.totalorder %s1777_s11, %s1777_s11 }
  0x61   : > { %p1780_p12 = pnand %p1778_p9, %p2060_p13  ;;  %p1787_p4 = por %p1786_p2, %p1785_p1 }
  0x63   : > { %p1781_p0 = pneg %p1780_p12 }
  0x65   : > { %p1788_p8 = pnand %p1787_p4, %p1781_p0 }
  0x67   : > { %1791 = shalt.err (!%p1788_p8)
}
  0x68   : > { %1622 = dma.hbm_to_vmem [thread:$0]  (!%p2044_p11), %s2403_s4, 512, %s254_s16, [#allocation9], %s1935_s13, %s1935_s13, %s1936_s15  }
  0x69   : > { %s2133_s22 = sadd.s32 1, %s1930_s27   ;;  %s34_s17 = sadd.s32 1, %s1926_s26 }
  0x6a   : > { %s31_s12 = ssub.s32 %s1930_s27, %s2133_s22  ;;  %p41_p8 = scmp.ne.s32.totalorder %s1926_s26, %s1922_s25 }
  0x6b   : > { %p32_p4 = scmp.eq.s32.totalorder %s31_s12, 0  ;;  %p42_p13 = scmp.eq.s32.totalorder %s1930_s27, 0 }
  0x6c   : > { %p1637_p6 = scmp.lt.s32.totalorder %s1930_s27, 2  ;;  %p2404_p3 = scmp.eq.s32.totalorder %s2014_s28, 1 }
  0x6d   : > { %s2143_s18 = scalar_select %p32_p4, %s1926_s26, %s34_s17  }
  0x6e   : > { %p43_p10 = por %p42_p13, %p41_p8  ;;  %p2147_p5 = por %p2404_p3, %p41_p8 }
  0x6f   : > { %s273_s20 = sand.u32 1, %s1926_s26   ;;  %s1442_s21 = sshll.u32 %s1930_s27, 7 }
  0x70   : > { %s2405_s19 = scalar_select %p2147_p5, 1, 0 }
  0x71   : > { %s2153_s16 = sshll.u32 %s273_s20, 3  ;;  %s2158_s23 = scalar_lea.hbm %s2379_s0, %s1442_s21 }
  0x72   : > { %s277_s29 = scalar_lea.vmem [#allocation2], %s2153_s16  ;;  %p2161_p11 = pnand %p1637_p6, %p43_p10 }
  0x73   : > { %s284_s10 = sshll.u32 %s277_s29, 4  ;;  %s2170_s12 = scalar_lea.hbm %s2380_s1, %s1442_s21  ;;  %s2165_s10 = int_to_ptr.vmem [resolvable:$true] %s284_s10 }
  0x74   : > { %s274_s17 = scalar_lea.sflag [#allocation3], %s273_s20  ;;  %s1792_s13 = scalar_lea.hbm %s2158_s23, 128 }
  0x75   : > { %p1793_p7 = scmp.ne.s32.totalorder %s2158_s23, %s1792_s13  ;;  %p1794_p9 = pneg %p2161_p11 }
  0x76   : > { %s1797_s2 = scalar_lea.hbm %s2379_s0, 256  ;;  %p1798_p1 = scmp.lt.u32.totalorder %s2158_s23, %s2379_s0 }
  0x77   : > { %p1795_p12 = pnand %p1794_p9, %p1793_p7  ;;  %p1799_p2 = scmp.lt.u32.totalorder %s1797_s2, %s1792_s13 }
  0x78   : > { %p1801_p8 = scmp.lt.u32.totalorder %s1792_s13, %s2158_s23 }
  0x79   : > { %p1796_p0 = pneg %p1795_p12  ;;  %p1800_p4 = por %p1799_p2, %p1798_p1 }
  0x7b   : > { %p1802_p13 = por %p1801_p8, %p1800_p4 }
  0x7d   : > { %p1803_p6 = pnand %p1802_p13, %p1796_p0 }
  0x7f   : > { %1806 = shalt.err (!%p1803_p6)
}
  0x80   : > { %s1807_s20 = scalar_lea.vmem %s2165_s10, 128  ;;  %s1937_s21 = smov [#allocation2]  }
  0x81   : > { %p1808_p10 = scmp.ne.s32.totalorder %s2165_s10, %s1807_s20  ;;  %s1812_s14 = sshll.u32 %s1937_s21, 4  ;;  %s1813_s14 = int_to_ptr.vmem [resolvable:$false] %s1812_s14 }
  0x82   : > { %s1814_s3 = scalar_lea.vmem %s1813_s14, 256  ;;  %p1815_p12 = scmp.lt.s32.totalorder %s2165_s10, %s1813_s14 }
  0x83   : > { %p1810_p3 = pnand %p1808_p10, %p1794_p9  ;;  %p1816_p1 = scmp.lt.s32.totalorder %s1814_s3, %s1807_s20 }
  0x85   : > { %p1811_p7 = pneg %p1810_p3  ;;  %p1817_p2 = por %p1816_p1, %p1815_p12 }
  0x87   : > { %p1818_p4 = pnand %p1817_p2, %p1811_p7 }
  0x89   : > { %1821 = shalt.err (!%p1818_p4)
}
  0x8a   : > { %1626 = dma.hbm_to_vmem [thread:$0]  (!%p2161_p11), %s2158_s23, 128, %s2165_s10, %s274_s17  }
  0x8b   : > { %s291_s2 = sand.u32 1, %s1930_s27   ;;  %s295_s4 = scalar_lea.vmem [#allocation5], %s2153_s16 }
  0x8c   : > { %s302_s8 = sshll.u32 %s295_s4, 4  ;;  %s292_s13 = scalar_lea.sflag [#allocation6], %s291_s2  ;;  %s303_s8 = int_to_ptr.vmem [resolvable:$true] %s302_s8 }
  0x8d   : > { %s1822_s15 = scalar_lea.hbm %s2170_s12, 128  ;;  %s1827_s21 = scalar_lea.hbm %s2380_s1, 256 }
  0x8e   : > { %p1823_p0 = scmp.ne.s32.totalorder %s2170_s12, %s1822_s15  ;;  %p1828_p6 = scmp.lt.u32.totalorder %s2170_s12, %s2380_s1 }
  0x8f   : > { %p1829_p10 = scmp.lt.u32.totalorder %s1827_s21, %s1822_s15  ;;  %p1831_p7 = scmp.lt.u32.totalorder %s1822_s15, %s2170_s12 }
  0x90   : > { %p1825_p8 = pnand %p1823_p0, %p1794_p9 }
  0x91   : > { %p1830_p3 = por %p1829_p10, %p1828_p6 }
  0x92   : > { %p1826_p13 = pneg %p1825_p8 }
  0x93   : > { %p1832_p12 = por %p1831_p7, %p1830_p3 }
  0x95   : > { %p1833_p1 = pnand %p1832_p12, %p1826_p13 }
  0x97   : > { %1836 = shalt.err (!%p1833_p1)
}
  0x98   : > { %s1837_s16 = scalar_lea.vmem %s303_s8, 128  ;;  %s1938_s23 = smov [#allocation5]  }
  0x99   : > { %p1838_p2 = scmp.ne.s32.totalorder %s303_s8, %s1837_s16  ;;  %s1842_s10 = sshll.u32 %s1938_s23, 4  ;;  %s1843_s10 = int_to_ptr.vmem [resolvable:$false] %s1842_s10 }
  0x9a   : > { %s1844_s17 = scalar_lea.vmem %s1843_s10, 256  ;;  %p1845_p8 = scmp.lt.s32.totalorder %s303_s8, %s1843_s10 }
  0x9b   : > { %p1840_p4 = pnand %p1838_p2, %p1794_p9  ;;  %p1846_p5 = scmp.lt.s32.totalorder %s1844_s17, %s1837_s16 }
  0x9d   : > { %p1841_p0 = pneg %p1840_p4  ;;  %p1847_p6 = por %p1846_p5, %p1845_p8 }
  0x9f   : > { %p1848_p10 = pnand %p1847_p6, %p1841_p0 }
  0xa1   : > { %1851 = shalt.err (!%p1848_p10)
}
  0xa2   : > { %1629 = dma.hbm_to_vmem [thread:$0]  (!%p2161_p11), %s2170_s12, 128, %s303_s8, %s292_s13  }
  0xa3   : > { %p2407_p13 = scmp.ne.s32.totalorder %s2398_s9, 0 }
  0xa4   : > { %s2221_s2 = sand.u32 (!%p2407_p13), 1, %s1922_s25   ;;  %p2408_p5 = scmp.ne.s32.totalorder (!%p2407_p13), %s2395_s30, 0 }
  0xa5   : > { %311 = sbr.rel (%p2407_p13) target bundleno = 1666 (0x682), region = 48  ;;  %s2224_s4 = sshll.u32 (!%p2407_p13), %s2221_s2, 3 }
  0xa6   : > { %s314_s15 = scalar_lea.sflag (!%p2407_p13), [#allocation3], %s2221_s2  ;;  %s317_s29 = scalar_lea.vmem (!%p2407_p13), [#allocation2], %s2224_s4 }
  0xac   : > { %1897 = dma.done.wait (%p2408_p5), %s314_s15, 128  }
  0xad   : > { %1899 = vsyncadd (%p2408_p5), %s314_s15, 4294967168  ;;  %s322_s9 = sand.u32 1, %s2014_s28   ;;  %s326_s12 = scalar_lea.vmem [#allocation5], %s2224_s4 }
  0xae   : > { %s323_s11 = scalar_lea.sflag [#allocation6], %s322_s9 }
  0xaf   : > { %1901 = dma.done.wait (%p2408_p5), %s323_s11, 128  }
  0xb0   : > { %1903 = vsyncadd (%p2408_p5), %s323_s11, 4294967168  ;;  %p2409_p11 = scmp.eq.s32.totalorder %s2014_s28, 0 }
  0xb2   : > { %1905 = dma.done.wait (%p2409_p11), [#allocation6], 512   ;;  %p2410_p9 = pmov %p2409_p11 }
  0xb4   : > { %1907 = vsyncadd (%p2410_p9), [#allocation6], 4294966784  ;;  %p2411_p3 = pmov %p2410_p9 }
  0xb6   : > { %1909 = dma.done.wait (%p2411_p3), [#allocation9], 1024   ;;  %p2412_p7 = pmov %p2411_p3 }
  0xb7   : > { %v1939_v0 = vmov 0.0|0.0   ;;  %vm1940_vm0 = vmmov 0   ;;  %v1941_v1 = vmov 0.0   ;;  %v377_v2 = vld [vmem:[#allocation7] sm:$0xff]  ;;  %v378_v3 = vld [vmem:[#allocation7 + $0x8] sm:$0xff]  ;;  %v379_v4 = vld [vmem:[#allocation7 + $0x10] sm:$0xff] }
  0xb8   : > { %1911 = vsyncadd (%p2412_p7), [#allocation9], 4294966272  ;;  %1577 = vmatprep.subr.bf16.mxu0 %v1939_v0  ;;  %1512 = vmatprep.mubr.msk.f32.mxu0 %vm1940_vm0, %v1941_v1  ;;  %v1578_v5 = vpack.c.bf16 %v378_v3, %v377_v2  ;;  %v380_v6 = vld [vmem:[#allocation7 + $0x18] sm:$0xff]  ;;  %v2252_v8 = vld [vmem:[%s317_s29] sm:$0xff]  ;;  %vm388_vm1 = vcmask 261120   ;;  %s1942_s13 = smov 120  }
  0xb9   : > { %1583 = vmatprep.subr.bf16.mxu1 %v1939_v0  ;;  %1523 = vmatprep.mubr.msk.f32.mxu1 %vm1940_vm0, %v1941_v1  ;;  %v1581_v7 = vpack.c.bf16 %v380_v6, %v379_v4  ;;  %v375_v9 = vld [vmem:[%s326_s12] sm:$0xff]  ;;  %v462_v11 = vld [vmem:[#allocation8] sm:$0xff]  ;;  %v463_v12 = vld [vmem:[#allocation8 + $0x8] sm:$0xff]  ;;  %s1943_s20 = smov 96   ;;  %s1944_s21 = smov 80   ;;  %vm542_vm2 = vcmask 64512  }
  0xba   : > { %1579 = vmatpush3.bf16.msra.mxu0 %v1578_v5  ;;  %v376_v10 = vadd.f32 %v375_v9, %v2252_v8  ;;  %v464_v13 = vld [vmem:[#allocation8 + $0x10] sm:$0xff]  ;;  %v1584_v14 = vpack.c.bf16 %v463_v12, %v462_v11  ;;  %v465_v15 = vld [vmem:[#allocation8 + $0x18] sm:$0xff]  ;;  %v1452_v17 = vld [vmem:[%s2384_s5] ss:$0 sm:$0xff]  ;;  %s1945_s14 = smov 88   ;;  %s1946_s3 = smov 72  }
  0xbb   : > { %1580 = vmatprep.subr.bf16.mxu0 %v1939_v0  ;;  %v1587_v16 = vpack.c.bf16 %v465_v15, %v464_v13  ;;  %s1947_s16 = smov 112   ;;  %s1948_s23 = smov 104   ;;  %vm1210_vm3 = vcmask 130048   ;;  %vm1212_vm4 = vcmask 195584  }
  0xbc   : > { %1585 = vmatpush3.bf16.msra.mxu1 %v1584_v14  ;;  %s1949_s10 = smov 8   ;;  %s1950_s17 = smov 16  }
  0xbd   : > { %1586 = vmatprep.subr.bf16.mxu1 %v1939_v0  ;;  %s1951_s15 = smov 24   ;;  %s1470_s11 = sshll.u32 %s2014_s28, 7 }
  0xbe   : > { %1582 = vmatpush3.bf16.msra.mxu0 %v1581_v7  ;;  %s373_s12 = scalar_lea.vmem [#allocation11], %s2224_s4  ;;  %p2413_p1 = scmp.ne.s32.totalorder %s2405_s19, 0 }
  0xbf   : > { %1536 = vmatprep.subr.mxu0 %v1941_v1  ;;  %s1314_s30 = sshll.u32 %s373_s12, 4  ;;  %s1952_s4 = smov [#allocation11]   ;;  %s2336_s30 = int_to_ptr.vmem [resolvable:$true] %s1314_s30 }
  0xc0   : > { %1588 = vmatpush3.bf16.msra.mxu1 %v1587_v16  ;;  %v1214_v16 = vld [vmem:[#allocation10] sm:$0xff]  ;;  %s1852_s28 = scalar_lea.vmem %s2336_s30, 128 }
  0xc1   : > { %1513 = vmatmul.mubr.msk.f32.vlgmr.msra.gmra.mrb[0].mxu0 %vm388_vm1, %v376_v10  ;;  %1526 = vmatprep.subr.mxu1 %v1941_v1  ;;  %p1853_p12 = scmp.ne.s32.totalorder %s2336_s30, %s1852_s28 }
  0xc2   : > { %1538 = vmatprep.mubr.msk.f32.mxu0 %vm1940_vm0, %v1941_v1 }
  0xc3   : > { %1524 = vmatmul.mubr.msk.f32.vlgmr.msra.gmra.mrb[0].mxu1 %vm388_vm1, %v2252_v8  ;;  %p1854_p2 = pnand %p1853_p12, %p2413_p1 }
  0xc4   : > { %1528 = vmatprep.mubr.msk.f32.mxu1 %vm1940_vm0, %v1941_v1 }
  0xc5   : > { %p1855_p4 = pneg %p1854_p2 }
 0x194   : > { %v458_v18 = vpop.f32.mrb[0].mxu0 }
 0x195   : > { %v459_v19 = vadd.f32 %v1452_v17, %v458_v18  ;;  %v1514_v20 = vpop.f32.mrb[1].mxu0  ;;  %v1215_v17 = vld [vmem:[#allocation10 + $0x8] sm:$0xff]  ;;  %v1216_v18 = vld [vmem:[#allocation10 + $0x10] sm:$0xff] }
 0x196   : > { %v2272_v21 = vpop.f32.mrb[0].mxu1  ;;  %v1217_v20 = vld [vmem:[#allocation10 + $0x18] sm:$0xff] }
 0x197   : > { %701 = vrot.lane.b32.xlu1 %v459_v19, %s1942_s13  ;;  %540 = vrot.lane.b32.xlu0 %v459_v19, %s1943_s20  ;;  %v1525_v22 = vpop.f32.mrb[1].mxu1  ;;  %s2334_s20 = scalar_lea.hbm %s2386_s7, %s1470_s11 }
 0x19b   : > { %869 = vrot.lane.b32.xlu1 %v459_v19, %s1944_s21  ;;  %703 = vrot.lane.b32.xlu0 %v459_v19, %s1945_s14  ;;  %s1301_s21 = scalar_lea.sflag [#allocation4], %s2221_s2  ;;  %s1856_s14 = sshll.u32 %s1952_s4, 4  ;;  %s1857_s14 = int_to_ptr.vmem [resolvable:$false] %s1856_s14 }
 0x19c   : > { %p1859_p0 = scmp.lt.s32.totalorder %s2336_s30, %s1857_s14 }
 0x19f   : > { %1034 = vrot.lane.b32.xlu1 %v459_v19, %s1946_s3  ;;  %867 = vrot.lane.b32.xlu0 %v459_v19, %s1947_s16  ;;  %s1858_s3 = scalar_lea.vmem %s1857_s14, 256 }
 0x1a0   : > { %p1860_p8 = scmp.lt.s32.totalorder %s1858_s3, %s1852_s28 }
 0x1a2   : > { %p1861_p6 = por %p1860_p8, %p1859_p0 }
 0x1a3   : > { %1032 = vrot.lane.b32.xlu0 %v459_v19, %s1948_s23 }
 0x1a4   : > { %p1862_p10 = pnand %p1861_p6, %p1855_p4 }
 0x209   : > { %v702_v23 = vpop.permute.xlu1 %701  ;;  %v541_v24 = vpop.permute.xlu0 %540 }
 0x20a   : > { %1527 = vmatpush3.xpose.msk.msra.mxu1 %vm542_vm2, %v541_v24 }
 0x20b   : > { %1531 = vmatprep.subr.mxu1 %v1941_v1 }
 0x20d   : > { %1529 = vmatmul.mubr.msk.f32.vlgmr.msra.gmra.mrb[2].mxu1 %vm542_vm2, %v459_v19  ;;  %v704_v25 = vpop.permute.xlu0 %703  ;;  %v870_v26 = vpop.permute.xlu1 %869  ;;  %v1590_v19 = vpack.c.bf16 %v1215_v17, %v1214_v16 }
 0x20e   : > { %1537 = vmatpush3.xpose.msk.msra.mxu0 %vm542_vm2, %v704_v25  ;;  %1532 = vmatpush3.msra.mxu1 %v2272_v21 }
 0x20f   : > { %1546 = vmatprep.subr.mxu0 %v1941_v1  ;;  %1533 = vmatprep.mubr.msk.f32.mxu1 %vm1940_vm0, %v1941_v1 }
 0x210   : > { %1541 = vmatprep.subr.mxu1 %v1941_v1 }
 0x211   : > { %1539 = vmatmul.mubr.msk.f32.vlgmr.msra.gmra.mrb[2].mxu0 %vm542_vm2, %v702_v23  ;;  %v868_v27 = vpop.permute.xlu0 %867  ;;  %v1035_v28 = vpop.permute.xlu1 %1034 }
 0x212   : > { %1547 = vmatpush3.xpose.msk.msra.mxu0 %vm542_vm2, %v870_v26  ;;  %1548 = vmatprep.mubr.msk.f32.mxu0 %vm1940_vm0, %v1941_v1 }
 0x213   : > { %1556 = vmatprep.subr.mxu0 %v1941_v1 }
 0x215   : > { %1549 = vmatmul.mubr.msk.f32.vlgmr.msra.gmra.mrb[4].mxu0 %vm542_vm2, %v868_v27  ;;  %v1033_v29 = vpop.permute.xlu0 %1032 }
 0x216   : > { %1557 = vmatpush3.xpose.msk.msra.mxu0 %vm542_vm2, %v1035_v28  ;;  %1558 = vmatprep.mubr.msk.f32.mxu0 %vm1940_vm0, %v1941_v1 }
 0x217   : > { %1589 = vmatprep.subr.bf16.mxu0 %v1939_v0 }
 0x219   : > { %1559 = vmatmul.mubr.msk.f32.vlgmr.msra.gmra.mrb[6].mxu0 %vm542_vm2, %v1033_v29 }
 0x21a   : > { %1574 = vmatprep.mubr.msk.f32.mxu0 %vm1940_vm0, %v1941_v1  ;;  %1591 = vmatpush3.bf16.msra.mxu0 %v1590_v19 }
 0x21b   : > { %1592 = vmatprep.subr.bf16.mxu0 %v1939_v0 }
 0x2e0   : > { %v613_v30 = vpop.f32.mrb[2].mxu1 }
 0x2e1   : > { %v1530_v31 = vpop.f32.mrb[3].mxu1  ;;  %v617_v32 = vsel %vm542_vm2, %v613_v30, -inf }
 0x2e2   : > { %618 = vmax.xlane.f32.xlu1 %v617_v32 }
 0x2e4   : > { %v775_v33 = vpop.f32.mrb[2].mxu0 }
 0x2e5   : > { %v1540_v34 = vpop.f32.mrb[3].mxu0  ;;  %v779_v35 = vsel %vm542_vm2, %v775_v33, -inf }
 0x2e6   : > { %780 = vmax.xlane.f32.xlu0 %v779_v35  ;;  %v1467_v34 = vld [vmem:[%s2385_s6] ss:$0 sm:$0xff] }
 0x2e8   : > { %v941_v36 = vpop.f32.mrb[4].mxu0 }
 0x2e9   : > { %v1550_v37 = vpop.f32.mrb[5].mxu0  ;;  %v945_v38 = vsel %vm542_vm2, %v941_v36, -inf }
 0x2ea   : > { %946 = vmax.xlane.f32.xlu0 %v945_v38 }
 0x2ec   : > { %v1106_v39 = vpop.f32.mrb[6].mxu0 }
 0x2ed   : > { %v1560_v40 = vpop.f32.mrb[7].mxu0  ;;  %v1110_v41 = vsel %vm542_vm2, %v1106_v39, -inf }
 0x2ee   : > { %1111 = vmax.xlane.f32.xlu1 %v1110_v41 }
 0x36f   : > { %v619_v42 = vpop.xlane.xlu1 %618 }
 0x370   : > { %v620_v43 = vsub.f32 %v613_v30, %v619_v42 }
 0x372   : > { %v621_v44 = vmul.f32 1.442695, %v620_v43 }
 0x373   : > { %v781_v45 = vpop.xlane.xlu0 %780 }
 0x374   : > { %1692 = vpow2.f32 %v621_v44  ;;  %v782_v46 = vsub.f32 %v775_v33, %v781_v45 }
 0x376   : > { %v783_v47 = vmul.f32 1.442695, %v782_v46 }
 0x377   : > { %v947_v48 = vpop.xlane.xlu0 %946 }
 0x378   : > { %1694 = vpow2.f32 %v783_v47  ;;  %v948_v49 = vsub.f32 %v941_v36, %v947_v48 }
 0x37a   : > { %v949_v50 = vmul.f32 1.442695, %v948_v49 }
 0x37b   : > { %v1112_v57 = vpop.xlane.xlu1 %1111 }
 0x37c   : > { %1696 = vpow2.f32 %v949_v50  ;;  %v1113_v58 = vsub.f32 %v1106_v39, %v1112_v57 }
 0x37e   : > { %v1693_v51 = vpop.eup %1692  ;;  %v1114_v59 = vmul.f32 1.442695, %v1113_v58 }
 0x37f   : > { %v623_v52 = vsel %vm542_vm2, %v1693_v51, 0.0 }
 0x380   : > { %624 = vadd.xlane.f32.xlu0 %v623_v52  ;;  %1698 = vpow2.f32 %v1114_v59 }
 0x382   : > { %v1695_v53 = vpop.eup %1694 }
 0x383   : > { %v785_v54 = vsel %vm542_vm2, %v1695_v53, 0.0 }
 0x384   : > { %786 = vadd.xlane.f32.xlu1 %v785_v54 }
 0x386   : > { %v1697_v55 = vpop.eup %1696 }
 0x387   : > { %v951_v56 = vsel %vm542_vm2, %v1697_v55, 0.0 }
 0x388   : > { %952 = vadd.xlane.f32.xlu0 %v951_v56 }
 0x38a   : > { %v1699_v60 = vpop.eup %1698 }
 0x38b   : > { %v1116_v61 = vsel %vm542_vm2, %v1699_v60, 0.0 }
 0x395   : > { %956 = vrot.lane.b32.xlu1 %v2272_v21, %s1947_s16 }
 0x39e   : > { %791 = vrot.lane.b32.xlu0 %v2272_v21, %s1942_s13 }
 0x3b9   : > { %1117 = vadd.xlane.f32.xlu1 %v1116_v61 }
 0x3ca   : > { %1121 = vrot.lane.b32.xlu1 %v2272_v21, %s1948_s23  ;;  %v1593_v21 = vpack.c.bf16 %v1217_v20, %v1216_v18 }
 0x3cc   : > { %1594 = vmatpush3.bf16.msra.mxu0 %v1593_v21 }
 0x40d   : > { %v625_v62 = vpop.xlane.xlu0 %624 }
 0x40e   : > { %1700 = vrcp.f32 %v625_v62 }
 0x411   : > { %v787_v63 = vpop.xlane.xlu1 %786 }
 0x412   : > { %1702 = vrcp.f32 %v787_v63 }
 0x415   : > { %v953_v2 = vpop.xlane.xlu0 %952  ;;  %v957_v9 = vpop.permute.xlu1 %956 }
 0x416   : > { %1704 = vrcp.f32 %v953_v2 }
 0x418   : > { %v1701_v3 = vpop.eup %1700 }
 0x419   : > { %v627_v4 = vmul.f32 %v1701_v3, %v1693_v51  ;;  %v792_v5 = vpop.permute.xlu0 %791 }
 0x41b   : > { %1534 = vmatmul.mubr.msk.f32.vlgmr.msra.gmra.mrb[4].mxu1 %vm542_vm2, %v627_v4 }
 0x41c   : > { %v1703_v6 = vpop.eup %1702  ;;  %1542 = vmatpush3.msra.mxu1 %v792_v5  ;;  %1543 = vmatprep.mubr.msk.f32.mxu1 %vm1940_vm0, %v1941_v1 }
 0x41d   : > { %v789_v7 = vmul.f32 %v1703_v6, %v1695_v53  ;;  %1551 = vmatprep.subr.mxu1 %v1941_v1 }
 0x41f   : > { %1544 = vmatmul.mubr.msk.f32.vlgmr.msra.gmra.mrb[6].mxu1 %vm542_vm2, %v789_v7 }
 0x420   : > { %v1705_v10 = vpop.eup %1704  ;;  %1552 = vmatpush3.msra.mxu1 %v957_v9  ;;  %1553 = vmatprep.mubr.msk.f32.mxu1 %vm1940_vm0, %v1941_v1 }
 0x421   : > { %v955_v11 = vmul.f32 %v1705_v10, %v1697_v55  ;;  %1561 = vmatprep.subr.mxu1 %v1941_v1 }
 0x423   : > { %1554 = vmatmul.mubr.msk.f32.vlgmr.msra.gmra.mrb[8].mxu1 %vm542_vm2, %v955_v11 }
 0x424   : > { %1563 = vmatprep.mubr.msk.f32.mxu1 %vm1940_vm0, %v1941_v1 }
 0x446   : > { %v1118_v12 = vpop.xlane.xlu1 %1117 }
 0x447   : > { %1706 = vrcp.f32 %v1118_v12 }
 0x44a   : > { %v1122_v13 = vpop.permute.xlu1 %1121 }
 0x44b   : > { %1562 = vmatpush3.msra.mxu1 %v1122_v13 }
 0x451   : > { %v1707_v14 = vpop.eup %1706 }
 0x452   : > { %v1120_v15 = vmul.f32 %v1707_v14, %v1699_v60 }
 0x454   : > { %1564 = vmatmul.mubr.msk.f32.vlgmr.msra.gmra.mrb[10].mxu1 %vm542_vm2, %v1120_v15 }
 0x4ee   : > { %v697_v22 = vpop.f32.mrb[4].mxu1 }
 0x4ef   : > { %v1535_v23 = vpop.f32.mrb[5].mxu1 }
 0x4f2   : > { %v863_v1 = vpop.f32.mrb[6].mxu1 }
 0x4f3   : > { %1198 = vrot.lane.b32.xlu0 %v863_v1, %s1949_s10  ;;  %v1545_v24 = vpop.f32.mrb[7].mxu1 }
 0x4f6   : > { %v1028_v25 = vpop.f32.mrb[8].mxu1 }
 0x4f7   : > { %1202 = vrot.lane.b32.xlu1 %v1028_v25, %s1950_s17  ;;  %v1555_v26 = vpop.f32.mrb[9].mxu1 }
 0x527   : > { %v1193_v27 = vpop.f32.mrb[10].mxu1 }
 0x528   : > { %1206 = vrot.lane.b32.xlu0 %v1193_v27, %s1951_s15  ;;  %v1565_v28 = vpop.f32.mrb[11].mxu1 }
 0x565   : > { %v1199_v29 = vpop.permute.xlu0 %1198 }
 0x566   : > { %v1209_v0 = vsel %vm542_vm2, %v697_v22, %v1199_v29 }
 0x569   : > { %v1203_v30 = vpop.permute.xlu1 %1202 }
 0x56a   : > { %v1211_v31 = vsel %vm1210_vm3, %v1209_v0, %v1203_v30 }
 0x59a   : > { %v1207_v32 = vpop.permute.xlu0 %1206 }
 0x59b   : > { %v1213_v33 = vsel %vm1212_vm4, %v1211_v31, %v1207_v32 }
 0x59c   : > { %1575 = vmatmul.mubr.msk.f32.vlgmr.msra.gmra.mrb[8].mxu0 %vm388_vm1, %v1213_v33 }
 0x66f   : > { %v1294_v35 = vpop.f32.mrb[8].mxu0 }
 0x670   : > { %v1295_v36 = vadd.f32 %v1467_v34, %v1294_v35  ;;  %v1576_v37 = vpop.f32.mrb[9].mxu0 }
 0x672   : > { %v1298_v38 = vadd.f32 %v1295_v36, %v2252_v8 }
 0x674   : > { %1299 = vst.msk [vmem:[%s373_s12] sm:$0xff] %vm388_vm1, %v1298_v38 }
 0x675   : > { %1865 = shalt.err (!%p1862_p10)
}
 0x676   : > { %s1866_s2 = scalar_lea.hbm %s2334_s20, 128  ;;  %s1870_s10 = scalar_lea.hbm %s2386_s7, 256 }
 0x677   : > { %p1867_p13 = scmp.ne.s32.totalorder %s2334_s20, %s1866_s2  ;;  %p1871_p9 = scmp.lt.u32.totalorder %s2334_s20, %s2386_s7 }
 0x678   : > { %p1872_p3 = scmp.lt.u32.totalorder %s1870_s10, %s1866_s2  ;;  %p1874_p12 = scmp.lt.u32.totalorder %s1866_s2, %s2334_s20 }
 0x679   : > { %p1868_p5 = pnand %p1867_p13, %p2413_p1 }
 0x67a   : > { %p1873_p7 = por %p1872_p3, %p1871_p9 }
 0x67b   : > { %p1869_p11 = pneg %p1868_p5 }
 0x67c   : > { %p1875_p2 = por %p1874_p12, %p1873_p7 }
 0x67e   : > { %p1876_p4 = pnand %p1875_p2, %p1869_p11 }
 0x680   : > { %1879 = shalt.err (!%p1876_p4)
}
 0x681   : > { %1611 = dma.vmem_to_hbm [thread:$0]  (%p2413_p1), %s2336_s30, 128, %s2334_s20, %s1301_s21  }
 0x682 PF: > { %s2414_s29 = sld [smem:[#allocation17_spill]]  ;;  %s1326_s9 = sand.u32 1, %s1918_s24  }
 0x683   : > { %p2416_p8 = scmp.ge.s32.totalorder %s1930_s27, 2  ;;  %s1327_s11 = scalar_lea.sflag [#allocation4], %s1326_s9 }
 0x688   : > { %p2415_p0 = scmp.ne.s32.totalorder %s2414_s29, 0 }
 0x68a   : > { %p1631_p6 = pnand %p2416_p8, %p2415_p0 }
 0x68c   : > { %1913 = dma.done.wait (!%p1631_p6), %s1327_s11, 128  }
 0x68d   : > { %1915 = vsyncadd (!%p1631_p6), %s1327_s11, 4294967168  ;;  %p24_p10 = scmp.ge.s32.totalorder %s2133_s22, 4   ;;  %s2417_s24 = smov %s1922_s25 }
 0x68e   : > { %s2418_s25 = smov %s1926_s26  ;;  %s2419_s26 = smov %s2143_s18 }
 0x68f   : > { %s2420_s27 = smov %s2133_s22  ;;  %26 = sbr.rel (!%p24_p10) target bundleno = 12 (0xc), region = 118 }
 0x696   :  { %1332 = vsyncpa [#allocation3], 1 }
 0x697   :  { %1334 = vsyncpa [#allocation3 + $0x1], 1 }
 0x698   :  { %1335 = vsyncpa [#allocation6], 1 }
 0x699   :  { %1337 = vsyncpa [#allocation6 + $0x1], 1 }
 0x69a   :  { %1338 = vsyncpa [#allocation9], 1 }
 0x69b   :  { %1339 = vsyncpa [#allocation4], 1 }
 0x69c   :  { %1341 = vsyncpa [#allocation4 + $0x1], 1 }

</bundles_post_ra>
